<compile_context>
chip_gen: v7x
topology: tpu7x:2x2x1
jax: 0.10.0
libtpu: 0.0.40
codegen_flags: <defaults>
</compile_context>

<pallas_src>
import jax
import jax.numpy as jnp
from jax.experimental import pallas as pl
from jax.experimental.pallas import tpu as pltpu


def _round_up(x, m):
    return ((x + m - 1) // m) * m


def cbow_kernel(idx_ref, wf_ref, b_ref, out_ref):
    idx = idx_ref[...]                                    # (TB, C) int32
    TB, C = idx.shape
    V = wf_ref.shape[0]

    # counts[b, v] = #times token v appears in context row b.
    # 2-D (TB, V) lane-dense accumulation over C (tiny, static -> unrolled),
    # kept in int32 on the VPU; no 3-D one-hot, no XLU reduction.
    vocab_iota = jax.lax.broadcasted_iota(jnp.int32, (TB, V), 1)
    counts = jnp.zeros((TB, V), dtype=jnp.int32)
    for c in range(C):
        # NOTE: idx tile is lane-sparse (C of 128 lanes); fine at C=4.
        counts = counts + (vocab_iota == idx[:, c:c + 1]).astype(jnp.int32)

    # Single cast (exact: counts <= C), then one lane-dense (TB,V)x(V,V) MXU
    # matmul with f32 accumulation implements embedding-sum + Linear fused.
    counts = counts.astype(wf_ref.dtype)
    logits = jnp.dot(counts, wf_ref[...], preferred_element_type=jnp.float32)
    out_ref[...] = logits + b_ref[...]                    # (TB, V) f32


def cbow_forward(indices, embeddings, weight, bias, *,
                 block_b=None, compute_dtype=jnp.bfloat16):
    B, C = indices.shape
    V, D = embeddings.shape

    # Fuse the two matmuls once per call:  W_fused = E @ W.T   (V, V)
    w_fused = jnp.dot(embeddings, weight.T,
                      preferred_element_type=jnp.float32).astype(compute_dtype)
    bias2d = bias.reshape(1, V).astype(jnp.float32)

    # Batch tile choice: big tiles (<=512) for MXU M-fill & low step overhead,
    # but >=2 tiles when B allows so v7x's two TensorCores both get work.
    if block_b is None:
        block_b = min(512, _round_up(pl.cdiv(B, 2), 8))
    tb = min(_round_up(block_b, 8), _round_up(B, 8))

    pad = (-B) % tb
    if pad:
        indices = jnp.pad(indices, ((0, pad), (0, 0)))    # padded rows: token 0
    b_pad = B + pad
    grid = (b_pad // tb,)

    out = pl.pallas_call(
        cbow_kernel,
        out_shape=jax.ShapeDtypeStruct((b_pad, V), jnp.float32),
        grid=grid,
        in_specs=[
            pl.BlockSpec((tb, C), lambda i: (i, 0)),      # indices: batch-tiled
            pl.BlockSpec((V, V), lambda i: (0, 0)),       # fused weight (resident)
            pl.BlockSpec((1, V), lambda i: (0, 0)),       # bias
        ],
        out_specs=pl.BlockSpec((tb, V), lambda i: (i, 0)),
        compiler_params=pltpu.CompilerParams(
            dimension_semantics=("parallel",)),           # independent batch tiles
    )(indices.astype(jnp.int32), w_fused, bias2d)

    return out[:B] if pad else out


if __name__ == "__main__":
    # Small, CBOW-consistent shapes.
    vocab_size = 128      # V
    embedding_dim = 32    # D
    batch = 64            # B
    context = 4           # C (context window size)

    key = jax.random.PRNGKey(0)
    k_emb, k_w, k_b, k_idx = jax.random.split(key, 4)

    # nn.Embedding default init: N(0, 1)
    embeddings = jax.random.normal(k_emb, (vocab_size, embedding_dim), dtype=jnp.float32)
    # nn.Linear default init: U(-1/sqrt(fan_in), 1/sqrt(fan_in))
    bound = 1.0 / (embedding_dim ** 0.5)
    weight = jax.random.uniform(k_w, (vocab_size, embedding_dim),
                                minval=-bound, maxval=bound, dtype=jnp.float32)
    bias = jax.random.uniform(k_b, (vocab_size,),
                              minval=-bound, maxval=bound, dtype=jnp.float32)

    indices = jax.random.randint(k_idx, (batch, context), 0, vocab_size, dtype=jnp.int32)

    # Default tiling: two 32-row "parallel" tiles (both v7x TCs busy; ~free on v5e/v6e).
    out = cbow_forward(indices, embeddings, weight, bias)
    out = jax.block_until_ready(out)

    # Pure-JAX f32 reference (embedding gather + sum + linear).
    ref = jnp.take(embeddings, indices, axis=0).sum(axis=1) @ weight.T + bias
    assert out.shape == (batch, vocab_size)
    # Tolerance sized for the bf16 fused weight (~2^-8 relative on W_fused,
    # summed over <= C=4 context tokens; f32 MXU accumulation).
    assert jnp.allclose(out, ref, atol=5e-2, rtol=5e-2), float(jnp.max(jnp.abs(out - ref)))

    print("KERNEL_OK")
</pallas_src>

<mosaic_0001>
module attributes {stable_mosaic.version = 11 : i64} {
  func.func @cbow_kernel(%arg0: i32, %arg1: memref<32x4xi32, #tpu.memory_space<vmem>>, %arg2: memref<128x128xbf16, #tpu.memory_space<vmem>>, %arg3: memref<1x128xf32, #tpu.memory_space<vmem>>, %arg4: memref<32x128xf32, #tpu.memory_space<vmem>>) attributes {dimension_semantics = [#tpu.dimension_semantics<parallel>], iteration_bounds = array<i64: 2>, scalar_prefetch = 0 : i64, scratch_operands = 0 : i64, tpu.core_type = #tpu.core_type<tc>, window_params = [{transform_indices = @transform_0, window_bounds = array<i64: 32, 4>}, {pipeline_mode = #tpu.pipeline_mode<synchronous>, transform_indices = @transform_1, window_bounds = array<i64: 128, 128>}, {pipeline_mode = #tpu.pipeline_mode<synchronous>, transform_indices = @transform_2, window_bounds = array<i64: 1, 128>}, {transform_indices = @transform_3, window_bounds = array<i64: 32, 128>}]} {
    %c0 = arith.constant 0 : index
    %c0_0 = arith.constant 0 : index
    %0 = vector.load %arg1[%c0, %c0_0] : memref<32x4xi32, #tpu.memory_space<vmem>>, vector<32x4xi32>
    %1 = tpu.iota {dimensions = array<i32: 1>} : vector<32x128xi32>
    %c0_i32 = arith.constant 0 : i32
    %2 = vector.broadcast %c0_i32 : i32 to vector<32x128xi32>
    %3 = vector.extract_strided_slice %0 {offsets = [0, 0], sizes = [32, 1], strides = [1, 1]} : vector<32x4xi32> to vector<32x1xi32>
    %4 = vector.broadcast %3 : vector<32x1xi32> to vector<32x128xi32>
    %5 = arith.cmpi eq, %1, %4 : vector<32x128xi32>
    %6 = arith.extui %5 : vector<32x128xi1> to vector<32x128xi32>
    %7 = arith.addi %2, %6 : vector<32x128xi32>
    %8 = vector.extract_strided_slice %0 {offsets = [0, 1], sizes = [32, 1], strides = [1, 1]} : vector<32x4xi32> to vector<32x1xi32>
    %9 = vector.broadcast %8 : vector<32x1xi32> to vector<32x128xi32>
    %10 = arith.cmpi eq, %1, %9 : vector<32x128xi32>
    %11 = arith.extui %10 : vector<32x128xi1> to vector<32x128xi32>
    %12 = arith.addi %7, %11 : vector<32x128xi32>
    %13 = vector.extract_strided_slice %0 {offsets = [0, 2], sizes = [32, 1], strides = [1, 1]} : vector<32x4xi32> to vector<32x1xi32>
    %14 = vector.broadcast %13 : vector<32x1xi32> to vector<32x128xi32>
    %15 = arith.cmpi eq, %1, %14 : vector<32x128xi32>
    %16 = arith.extui %15 : vector<32x128xi1> to vector<32x128xi32>
    %17 = arith.addi %12, %16 : vector<32x128xi32>
    %18 = vector.extract_strided_slice %0 {offsets = [0, 3], sizes = [32, 1], strides = [1, 1]} : vector<32x4xi32> to vector<32x1xi32>
    %19 = vector.broadcast %18 : vector<32x1xi32> to vector<32x128xi32>
    %20 = arith.cmpi eq, %1, %19 : vector<32x128xi32>
    %21 = arith.extui %20 : vector<32x128xi1> to vector<32x128xi32>
    %22 = arith.addi %17, %21 : vector<32x128xi32>
    %23 = arith.sitofp %22 : vector<32x128xi32> to vector<32x128xbf16>
    %c0_1 = arith.constant 0 : index
    %c0_2 = arith.constant 0 : index
    %24 = vector.load %arg2[%c0_1, %c0_2] : memref<128x128xbf16, #tpu.memory_space<vmem>>, vector<128x128xbf16>
    %cst = arith.constant dense<0.000000e+00> : vector<32x128xf32>
    %25 = tpu.matmul %23, %24, %cst {dimension_numbers = #tpu.dot_dimension_numbers<[1], [0], [0], [1], [0, 0, 1, 1], [], []>} : vector<32x128xbf16>, vector<128x128xbf16>, vector<32x128xf32> -> vector<32x128xf32>
    %c0_3 = arith.constant 0 : index
    %c0_4 = arith.constant 0 : index
    %26 = vector.load %arg3[%c0_3, %c0_4] : memref<1x128xf32, #tpu.memory_space<vmem>>, vector<1x128xf32>
    %27 = vector.broadcast %26 : vector<1x128xf32> to vector<32x128xf32>
    %28 = arith.addf %25, %27 : vector<32x128xf32>
    %c0_5 = arith.constant 0 : index
    %c0_6 = arith.constant 0 : index
    %29 = vector.load %arg4[%c0_5, %c0_6] : memref<32x128xf32, #tpu.memory_space<vmem>>, vector<32x128xf32>
    tpu.vector_store %arg4[%c0_5, %c0_6], %28 {strides = array<i32>} : memref<32x128xf32, #tpu.memory_space<vmem>>, vector<32x128xf32>,
    return
  }
  func.func @transform_0(%arg0: i32) -> (i32, i32) {
    %c0_i32 = arith.constant 0 : i32
    %c0_i32_0 = arith.constant 0 : i32
    return %arg0, %c0_i32 : i32, i32
  }
  func.func @transform_1(%arg0: i32) -> (i32, i32) {
    %c0_i32 = arith.constant 0 : i32
    %c0_i32_0 = arith.constant 0 : i32
    %c0_i32_1 = arith.constant 0 : i32
    return %c0_i32, %c0_i32_0 : i32, i32
  }
  func.func @transform_2(%arg0: i32) -> (i32, i32) {
    %c0_i32 = arith.constant 0 : i32
    %c0_i32_0 = arith.constant 0 : i32
    %c0_i32_1 = arith.constant 0 : i32
    return %c0_i32, %c0_i32_0 : i32, i32
  }
  func.func @transform_3(%arg0: i32) -> (i32, i32) {
    %c0_i32 = arith.constant 0 : i32
    %c0_i32_0 = arith.constant 0 : i32
    return %arg0, %c0_i32 : i32, i32
  }
}

</mosaic_0001>

<bundles_post_ra>
// kernel: tpu_custom_call.1
= control target key start
LH: loop header
LB: loop body
LE: loop exit
PB: predicated region body
PF: predicated region fallthrough
CT: control target
= control target key end

     0   :  { %8 = vsyncpa [#allocation3], 0  ;;  %s829_s0 = inlined_call_operand.vmem [shape: s32[64,4], index: 0, kind: input, shape index: {}]   ;;  %s830_s1 = inlined_call_operand.vmem [shape: bf16[128,128], index: 1, kind: input, shape index: {}]   ;;  %s831_s2 = inlined_call_operand.vmem [shape: f32[1,128], index: 2, kind: input, shape index: {}]   ;;  %s832_s3 = inlined_call_operand.hbm [shape: f32[64,128], index: 3, kind: output, shape index: {}]  }
   0x1   :  { %10 = vsyncpa [#allocation3 + $0x1], 0  ;;  %s682_s12 = smov 0   ;;  %s684_s13 = smov 0  }
   0x2   :  { %s686_s14 = smov 0   ;;  %s688_s15 = smov 0  }
   0x3 LB: > { %s703_s16 = sadd.s32 4294967295, %s653_s15   ;;  %s477_s17 = sadd.s32 4294967294, %s653_s15   ;;  %s653_s15 = sphi %s688_s15, %s838_s15   ;;  %s649_s14 = sphi %s686_s14, %s837_s14   ;;  %s645_s13 = sphi %s684_s13, %s836_s13   ;;  %s641_s12 = sphi %s682_s12, %s835_s12  }
   0x4   : > { %s707_s18 = sadd.s32 1, %s653_s15   ;;  %s91_s19 = sadd.s32 1, %s649_s14 }
   0x5   : > { %s88_s20 = ssub.s32 %s653_s15, %s707_s18  ;;  %p101_p0 = scmp.ne.s32.totalorder %s649_s14, %s645_s13 }
   0x6   : > { %p89_p1 = scmp.eq.s32.totalorder %s88_s20, 0  ;;  %p102_p2 = scmp.eq.s32.totalorder %s703_s16, 1 }
   0x7   : > { %p107_p3 = scmp.ne.s32.totalorder %s645_s13, %s641_s12  ;;  %p108_p4 = scmp.eq.s32.totalorder %s477_s17, 1 }
   0x8   : > { %s718_s21 = scalar_select %p89_p1, %s649_s14, %s91_s19  }
   0x9   : > { %p720_p5 = por %p102_p2, %p101_p0  ;;  %p724_p6 = por %p108_p4, %p107_p3 }
   0xa   : > { %p480_p7 = scmp.ge.s32.totalorder %s653_s15, 1  ;;  %p141_p8 = scmp.lt.s32.totalorder %s653_s15, 3 }
   0xc   : > { %p142_p9 = pnand %p480_p7, %p141_p8 }
   0xd   : > { %s482_s24 = sshll.u32 (!%p142_p9), %s703_s16, 2  ;;  %v655_v0 = vmov (!%p142_p9), 1   ;;  %v656_v1 = vmov (!%p142_p9), 0   ;;  %v583_v6 = vld [vmem:[%s830_s1] sm:$0xff] (!%p142_p9)   ;;  %v584_v7 = vld [vmem:[%s830_s1 + $0x8] sm:$0xff] (!%p142_p9)   ;;  %v657_v8 = vmov (!%p142_p9), 2   ;;  %v177_v23 = vlaneseq (!%p142_p9) }
   0xe   : > { %145 = sbr.rel (%p142_p9) target bundleno = 429 (0x1ad), region = 32  ;;  %575 = vset.pattern.permute.xlu1 (!%p142_p9), %v655_v0  ;;  %574 = vset.pattern.permute.xlu0 (!%p142_p9), %v656_v1  ;;  %p166_p10 = scmp.lt.s32.totalorder (!%p142_p9), %s482_s24, 7  ;;  %v585_v9 = vld [vmem:[%s830_s1 + $0x10] sm:$0xff] (!%p142_p9)   ;;  %v658_v10 = vmov (!%p142_p9), 3   ;;  %v586_v11 = vld [vmem:[%s830_s1 + $0x18] sm:$0xff] (!%p142_p9)   ;;  %v587_v12 = vld [vmem:[%s830_s1 + $0x20] sm:$0xff] (!%p142_p9)  }
   0xf   : > { %509 = vmatprep.subr.bf16.mxu0 (!%p142_p9), %v583_v6  ;;  %v588_v13 = vld [vmem:[%s830_s1 + $0x28] sm:$0xff] (!%p142_p9)   ;;  %v589_v14 = vld [vmem:[%s830_s1 + $0x30] sm:$0xff] (!%p142_p9)   ;;  %v590_v15 = vld [vmem:[%s830_s1 + $0x38] sm:$0xff] (!%p142_p9)   ;;  %v178_v25 = vand.u32 (!%p142_p9), 127, %v177_v23  ;;  %s162_s27 = sand.u32 (!%p142_p9), 1, %s645_s13   ;;  %s498_s6 = sshll.u32 (!%p142_p9), %s703_s16, 9 }
  0x10   : > { %510 = vmatpush3.bf16.msra.mxu0 (!%p142_p9), %v583_v6  ;;  %s786_s9 = scalar_lea.hbm (!%p142_p9), %s832_s3, %s498_s6  ;;  %s788_s16 = scalar_lea.sflag (!%p142_p9), [#allocation3], %s162_s27 }
  0x11   : > { %511 = vmatprep.subr.bf16.mxu0 (!%p142_p9), %v584_v7  ;;  %s659_s11 = smov (!%p142_p9), [#allocation2]  }
  0x12   : > { %s595_s17 = sshll.u32 (!%p142_p9), %s659_s11, 4  ;;  %s596_s17 = int_to_ptr.vmem [resolvable:$false] %s595_s17 }
  0x13   : > { %s597_s19 = scalar_lea.vmem (!%p142_p9), %s596_s17, 1024 }
  0x14   : > { %512 = vmatpush3.bf16.msra.mxu0 (!%p142_p9), %v584_v7 }
  0x15   : > { %s840_s24 = smov (!%p166_p10, %s482_s24), 7  ;;  %513 = vmatprep.subr.bf16.mxu0 %v585_v9 }
  0x16   : > { %s483_s25 = sshll.u32 %s840_s24, 3 }
  0x17   : > { %s169_s28 = scalar_lea.vmem %s829_s0, %s483_s25 }
  0x18   : > { %v173_v2 = vld [vmem:[%s169_s28] sm:$0xff]  ;;  %v174_v3 = vld [vmem:[%s169_s28 + $0x8] sm:$0xff]  ;;  %v175_v4 = vld [vmem:[%s169_s28 + $0x10] sm:$0xff]  ;;  %514 = vmatpush3.bf16.msra.mxu0 %v585_v9 }
  0x19   : > { %200 = vperm.xlu1 %575, %v173_v2   ;;  %180 = vperm.xlu0 %574, %v173_v2   ;;  %v176_v5 = vld [vmem:[%s169_s28 + $0x18] sm:$0xff]  ;;  %s481_s28 = sshll.u32 %s162_s27, 5 }
  0x1a   : > { %515 = vmatprep.subr.bf16.mxu0 %v586_v11  ;;  %s164_s4 = scalar_lea.vmem [#allocation2], %s481_s28 }
  0x1b   : > { %s415_s5 = sshll.u32 %s164_s4, 4  ;;  %s781_s5 = int_to_ptr.vmem [resolvable:$true] %s415_s5 }
  0x1c   : > { %516 = vmatpush3.bf16.msra.mxu0 %v586_v11  ;;  %s591_s10 = scalar_lea.vmem %s781_s5, 512  ;;  %p598_p0 = scmp.lt.s32.totalorder %s781_s5, %s596_s17 }
  0x1d   : > { %203 = vperm.xlu1 %575, %v174_v3   ;;  %183 = vperm.xlu0 %574, %v174_v3   ;;  %p592_p11 = scmp.ne.s32.totalorder %s781_s5, %s591_s10  ;;  %p599_p1 = scmp.lt.s32.totalorder %s597_s19, %s591_s10 }
  0x1e   : > { %517 = vmatprep.subr.bf16.mxu0 %v587_v12 }
  0x1f   : > { %p593_p12 = pnand %p592_p11, %p720_p5  ;;  %p600_p2 = por %p599_p1, %p598_p0 }
  0x20   : > { %518 = vmatpush3.bf16.msra.mxu0 %v587_v12 }
  0x21   : > { %576 = vset.pattern.permute.xlu1 %v656_v1  ;;  %186 = vperm.xlu0 %574, %v175_v4   ;;  %p594_p13 = pneg %p593_p12 }
  0x22   : > { %189 = vperm.xlu1 %576, %v176_v5   ;;  %519 = vmatprep.subr.bf16.mxu0 %v588_v13 }
  0x23   : > { %p601_p3 = pnand %p600_p2, %p594_p13 }
  0x24   : > { %520 = vmatpush3.bf16.msra.mxu0 %v588_v13 }
  0x25   : > { %577 = vset.pattern.permute.xlu0 %v655_v0  ;;  %521 = vmatprep.subr.bf16.mxu0 %v589_v14 }
  0x26   : > { %578 = vset.pattern.permute.xlu1 %v655_v0  ;;  %206 = vperm.xlu0 %577, %v175_v4  }
  0x27   : > { %209 = vperm.xlu1 %578, %v176_v5  }
  0x28   : > { %522 = vmatpush3.bf16.msra.mxu0 %v589_v14 }
  0x29   : > { %523 = vmatprep.subr.bf16.mxu0 %v590_v15 }
  0x2a   : > { %580 = vset.pattern.permute.xlu0 %v657_v8 }
  0x2b   : > { %579 = vset.pattern.permute.xlu1 %v657_v8  ;;  %227 = vperm.xlu0 %580, %v174_v3  }
  0x2c   : > { %224 = vperm.xlu1 %579, %v173_v2   ;;  %524 = vmatpush3.bf16.msra.mxu0 %v590_v15 }
  0x2f   : > { %581 = vset.pattern.permute.xlu0 %v658_v10 }
  0x30   : > { %230 = vperm.xlu1 %579, %v175_v4   ;;  %248 = vperm.xlu0 %581, %v173_v2  }
  0x34   : > { %233 = vperm.xlu1 %579, %v176_v5   ;;  %257 = vperm.xlu0 %581, %v176_v5   ;;  %v484_v5 = vld [vmem:[%s831_s2] ss:$0 sm:$0xff] }
  0x38   : > { %582 = vset.pattern.permute.xlu1 %v658_v10 }
  0x39   : > { %251 = vperm.xlu1 %582, %v174_v3  }
  0x3d   : > { %254 = vperm.xlu1 %582, %v175_v4  }
  0x98   : > { %v201_v16 = vpop.permute.xlu1 %200  ;;  %v181_v17 = vpop.permute.xlu0 %180 }
  0x99   : > { %vm211_vm0 = vcmp.eq.s32.totalorder %v178_v25, %v201_v16  ;;  %vm191_vm1 = vcmp.eq.s32.totalorder %v178_v25, %v181_v17 }
  0x9a   : > { %v215_v30 = vsel %vm211_vm0, 1, %v656_v1  ;;  %v195_v31 = vsel %vm191_vm1, 1, %v656_v1 }
  0x9b   : > { %v219_v38 = vadd.s32 %v215_v30, %v195_v31 }
  0x9c   : > { %v204_v18 = vpop.permute.xlu1 %203  ;;  %v184_v19 = vpop.permute.xlu0 %183 }
  0x9d   : > { %vm212_vm2 = vcmp.eq.s32.totalorder %v178_v25, %v204_v18  ;;  %vm192_vm3 = vcmp.eq.s32.totalorder %v178_v25, %v184_v19 }
  0x9e   : > { %v216_v32 = vsel %vm212_vm2, 1, %v656_v1  ;;  %v196_v33 = vsel %vm192_vm3, 1, %v656_v1 }
  0x9f   : > { %v220_v39 = vadd.s32 %v216_v32, %v196_v33 }
  0xa0   : > { %v187_v20 = vpop.permute.xlu0 %186 }
  0xa1   : > { %v190_v21 = vpop.permute.xlu1 %189  ;;  %vm193_vm11 = vcmp.eq.s32.totalorder %v178_v25, %v187_v20 }
  0xa2   : > { %vm194_vm7 = vcmp.eq.s32.totalorder %v178_v25, %v190_v21  ;;  %v197_v47 = vsel %vm193_vm11, 1, %v656_v1 }
  0xa3   : > { %v198_v41 = vsel %vm194_vm7, 1, %v656_v1 }
  0xa5   : > { %v207_v22 = vpop.permute.xlu0 %206 }
  0xa6   : > { %v210_v24 = vpop.permute.xlu1 %209  ;;  %vm213_vm9 = vcmp.eq.s32.totalorder %v178_v25, %v207_v22 }
  0xa7   : > { %vm214_vm4 = vcmp.eq.s32.totalorder %v178_v25, %v210_v24  ;;  %v217_v44 = vsel %vm213_vm9, 1, %v656_v1 }
  0xa8   : > { %v218_v35 = vsel %vm214_vm4, 1, %v656_v1  ;;  %v221_v53 = vadd.s32 %v217_v44, %v197_v47 }
  0xa9   : > { %v222_v45 = vadd.s32 %v218_v35, %v198_v41 }
  0xaa   : > { %v228_v26 = vpop.permute.xlu0 %227 }
  0xab   : > { %v225_v27 = vpop.permute.xlu1 %224  ;;  %vm236_vm6 = vcmp.eq.s32.totalorder %v178_v25, %v228_v26 }
  0xac   : > { %vm235_vm5 = vcmp.eq.s32.totalorder %v178_v25, %v225_v27  ;;  %v240_v40 = vsel %vm236_vm6, 1, %v656_v1 }
  0xad   : > { %v239_v36 = vsel %vm235_vm5, 1, %v656_v1  ;;  %v244_v48 = vadd.s32 %v240_v40, %v220_v39 }
  0xae   : > { %v243_v46 = vadd.s32 %v239_v36, %v219_v38 }
  0xaf   : > { %v231_v28 = vpop.permute.xlu1 %230  ;;  %v249_v29 = vpop.permute.xlu0 %248 }
  0xb0   : > { %vm259_vm8 = vcmp.eq.s32.totalorder %v178_v25, %v249_v29  ;;  %vm237_vm12 = vcmp.eq.s32.totalorder %v178_v25, %v231_v28 }
  0xb1   : > { %v263_v42 = vsel %vm259_vm8, 1, %v656_v1  ;;  %v241_v50 = vsel %vm237_vm12, 1, %v656_v1 }
  0xb2   : > { %v267_v52 = vadd.s32 %v263_v42, %v243_v46  ;;  %v245_v57 = vadd.s32 %v241_v50, %v221_v53 }
  0xb3   : > { %v234_v34 = vpop.permute.xlu1 %233  ;;  %v258_v37 = vpop.permute.xlu0 %257 }
  0xb4   : > { %vm238_vm10 = vcmp.eq.s32.totalorder %v178_v25, %v234_v34  ;;  %vm262_vm13 = vcmp.eq.s32.totalorder %v178_v25, %v258_v37  ;;  %v271_v60 = vcvt.s32.f32 %v267_v52 }
  0xb5   : > { %v242_v43 = vsel %vm238_vm10, 1, %v656_v1  ;;  %v266_v54 = vsel %vm262_vm13, 1, %v656_v1 }
  0xb6   : > { %v246_v51 = vadd.s32 %v242_v43, %v222_v45 }
  0xb8   : > { %v252_v49 = vpop.permute.xlu1 %251  ;;  %v270_v59 = vadd.s32 %v266_v54, %v246_v51 }
  0xb9   : > { %vm260_vm14 = vcmp.eq.s32.totalorder %v178_v25, %v252_v49 }
  0xba   : > { %v264_v55 = vsel %vm260_vm14, 1, %v656_v1  ;;  %v274_v2 = vcvt.s32.f32 %v270_v59 }
  0xbb   : > { %v268_v56 = vadd.s32 %v264_v55, %v244_v48 }
  0xbc   : > { %v255_v58 = vpop.permute.xlu1 %254 }
  0xbd   : > { %vm261_vm15 = vcmp.eq.s32.totalorder %v178_v25, %v255_v58  ;;  %v272_v61 = vcvt.s32.f32 %v268_v56 }
  0xbe   : > { %v265_v62 = vsel %vm261_vm15, 1, %v656_v1 }
  0xbf   : > { %v269_v63 = vadd.s32 %v265_v62, %v245_v57  ;;  %v275_v0 = vpack.c.bf16 %v272_v61, %v271_v60 }
  0xc1   : > { %v273_v3 = vcvt.s32.f32 %v269_v63  ;;  %525 = vmatprep.mubr.bf16.mxu0 %v275_v0 }
  0xc3   : > { %v276_v4 = vpack.c.bf16 %v274_v2, %v273_v3 }
  0xc5   : > { %526 = vmatmul.mubr.bf16.vlgmr.msra.gmra.mrb[0].mxu0 %v276_v4 }
 0x198   : > { %v527_v6 = vpop.f32.mrb[0].mxu0 }
 0x199   : > { %v391_v7 = vadd.f32 %v527_v6, %v484_v5  ;;  %v382_v1 = vpop.f32.mrb[1].mxu0 }
 0x19a   : > { %v383_v8 = vadd.f32 %v484_v5, %v382_v1  ;;  %v528_v9 = vpop.f32.mrb[2].mxu0 }
 0x19b   : > { %399 = vst [vmem:[%s164_s4 + $0x10] sm:$0xff] %v391_v7  ;;  %v394_v10 = vadd.f32 %v528_v9, %v484_v5  ;;  %v385_v11 = vpop.f32.mrb[3].mxu0 }
 0x19c   : > { %397 = vst [vmem:[%s164_s4] sm:$0xff] %v383_v8  ;;  %v386_v12 = vadd.f32 %v484_v5, %v385_v11 }
 0x19d   : > { %400 = vst [vmem:[%s164_s4 + $0x18] sm:$0xff] %v394_v10 }
 0x19e   : > { %398 = vst [vmem:[%s164_s4 + $0x8] sm:$0xff] %v386_v12 }
 0x19f   : > { %604 = shalt.err (!%p601_p3)
}
 0x1a0   : > { %s605_s20 = scalar_lea.hbm %s786_s9, 512  ;;  %s609_s26 = scalar_lea.hbm %s832_s3, 1024 }
 0x1a1   : > { %p606_p4 = scmp.ne.s32.totalorder %s786_s9, %s605_s20  ;;  %p610_p9 = scmp.lt.u32.totalorder %s786_s9, %s832_s3 }
 0x1a2   : > { %p611_p10 = scmp.lt.u32.totalorder %s609_s26, %s605_s20  ;;  %p613_p12 = scmp.lt.u32.totalorder %s605_s20, %s786_s9 }
 0x1a3   : > { %p607_p7 = pnand %p606_p4, %p720_p5 }
 0x1a4   : > { %p612_p11 = por %p611_p10, %p610_p9 }
 0x1a5   : > { %p608_p8 = pneg %p607_p7 }
 0x1a6   : > { %p614_p13 = por %p613_p12, %p612_p11 }
 0x1a8   : > { %p615_p0 = pnand %p614_p13, %p608_p8 }
 0x1aa   : > { %618 = shalt.err (!%p615_p0)
}
 0x1ab   : > { %s660_s29 = smov 128   ;;  %s661_s30 = smov 8  }
 0x1ac   : > { %529 = dma.vmem_to_hbm [thread:$0]  (%p720_p5), %s781_s5, 512, %s786_s9, %s788_s16, %s660_s29, %s660_s29, %s661_s30  }
 0x1ad PF: > { %p535_p1 = scmp.ge.s32.totalorder %s653_s15, 2  ;;  %s430_s4 = sand.u32 1, %s641_s12  }
 0x1ae   : > { %s431_s6 = scalar_lea.sflag [#allocation3], %s430_s4 }
 0x1af   : > { %p532_p2 = pnand %p535_p1, %p724_p6 }
 0x1b1   : > { %636 = dma.done.wait (!%p532_p2), %s431_s6, 512  }
 0x1b2   : > { %638 = vsyncadd (!%p532_p2), %s431_s6, 4294966784  ;;  %p13_p3 = scmp.ge.s32.totalorder %s707_s18, 4   ;;  %s835_s12 = smov %s645_s13 }
 0x1b3   : > { %s836_s13 = smov %s649_s14  ;;  %s837_s14 = smov %s718_s21 }
 0x1b4   : > { %s838_s15 = smov %s707_s18  ;;  %15 = sbr.rel (!%p13_p3) target bundleno = 3 (0x3), region = 67 }
 0x1bb   :  { %436 = vsyncpa [#allocation3], 1 }
 0x1bc   :  { %438 = vsyncpa [#allocation3 + $0x1], 1 }

</bundles_post_ra>
